<compile_context>
chip_gen: v7x
topology: tpu7x:2x2x1
jax: 0.10.0
libtpu: 0.0.40
codegen_flags: <defaults>
</compile_context>

<pallas_src>
import functools

import jax
import jax.numpy as jnp
import numpy as np
from jax.experimental import pallas as pl
from jax.experimental.pallas import tpu as pltpu


def _round_up(x, m):
    return (x + m - 1) // m * m


def _lstm_head_kernel(x_ref, p_ref, out_ref, *, T, I, H, whh_row0, wf_row0):
    """LSTM recurrence over time + tanh + final linear for one batch chunk.

    x_ref  : (T, Bc, I)   time-major inputs for this batch chunk
    p_ref  : (R, 4H)      packed, lane-dense parameter buffer:
                            rows [0, I)              : W_ih^T (i/f/o cols * 0.5)
                            row  I                   : b_ih + b_hh (scaled)
                            row  I+1                 : final bias, padded to 4H
                            rows [whh_row0, +H)      : W_hh^T (scaled)
                            rows [wf_row0, +H)       : final W^T, padded to 4H
    out_ref: (Bc, 4H)     predictions, real values in columns [0, 2)
    """
    Bc = out_ref.shape[0]
    G4 = 4 * H

    # ---- single aligned load of the small parameter rows ---------------------
    misc = p_ref[0:whh_row0, :]                       # (8, 4H), sublane-aligned
    bias = misc[I:I + 1, :].reshape(1, 1, G4)         # combined LSTM bias
    bf = misc[I + 1:I + 2, :]                         # (1, 4H) final bias (padded)
    whh = p_ref[whh_row0:whh_row0 + H, :]             # (H, 4H) hidden->gates
    wf = p_ref[wf_row0:wf_row0 + H, :]                # (H, 4H) final weight (padded)

    # ---- prologue: input projection via VPU broadcast FMAs (K=I is tiny) -----
    x = x_ref[...]                                    # (T, Bc, I)
    xp = bias                                         # broadcasts to (T, Bc, 4H)
    for d in range(I):
        w_d = misc[d:d + 1, :].reshape(1, 1, G4)
        xp = xp + x[:, :, d:d + 1] * w_d

    # ---- constant per-lane affine turning tanh into the right activation -----
    # i/f/o columns were pre-scaled by 0.5, so sigmoid(z) = 0.5*tanh(z/2)+0.5;
    # the g block keeps plain tanh.  Built once, outside the recurrence.
    lane = jax.lax.broadcasted_iota(jnp.int32, (Bc, G4), 1)
    is_g = (lane >= 2 * H) & (lane < 3 * H)
    g_scale = jnp.where(is_g, 1.0, 0.5).astype(jnp.float32)
    g_shift = jnp.where(is_g, 0.0, 0.5).astype(jnp.float32)

    h = jnp.zeros((Bc, H), jnp.float32)
    c = jnp.zeros((Bc, H), jnp.float32)

    # ---- serial recurrence: fully unrolled, h/c carried in vregs -------------
    for t in range(T):
        gates = xp[t] + jnp.dot(h, whh, preferred_element_type=jnp.float32)
        act = jnp.tanh(gates) * g_scale + g_shift      # [i, f, g, o] (1 EUP pass)
        rot = pltpu.roll(act, shift=2 * H, axis=1)     # [g, o, i, f] (1 XLU roll)
        ig = act[:, 0:H] * rot[:, 0:H]                 # i*g from offset-0 slices
        c = act[:, H:2 * H] * c + ig                   # f*c + i*g
        h = rot[:, H:2 * H] * jnp.tanh(c)              # o * tanh(c)

    # ---- epilogue: pred = tanh(h_T) @ W_f^T + b_f, lane-dense store ----------
    out_ref[...] = (
        jnp.dot(jnp.tanh(h), wf, preferred_element_type=jnp.float32) + bf)


def init_params(key, hidden_size, input_size=2):
    """PyTorch-style uniform(-1/sqrt(H), 1/sqrt(H)) init, raw layout."""
    H, I = hidden_size, input_size
    bound = 1.0 / np.sqrt(H)
    ks = jax.random.split(key, 6)
    u = lambda k, s: jax.random.uniform(k, s, jnp.float32, -bound, bound)
    return {
        "w_ih": u(ks[0], (4 * H, I)),   # PyTorch weight_ih_l0, gate order i,f,g,o
        "w_hh": u(ks[1], (4 * H, H)),   # PyTorch weight_hh_l0
        "b_ih": u(ks[2], (4 * H,)),
        "b_hh": u(ks[3], (4 * H,)),
        "w_f": u(ks[4], (2, H)),        # final Linear weight
        "b_f": u(ks[5], (2,)),          # final Linear bias
    }


def _pack_params(params):
    """Pack all weights into one lane-dense (R, 4H) buffer, pre-scaled so the
    kernel needs only tanh for every gate activation."""
    w_ih, w_hh = params["w_ih"], params["w_hh"]
    b = params["b_ih"] + params["b_hh"]
    w_f, b_f = params["w_f"], params["b_f"]
    four_h, I = w_ih.shape
    H = four_h // 4
    n_out = w_f.shape[0]

    # 0.5 on i/f/o gate columns (sigmoid-via-tanh), 1.0 on the g columns.
    col_scale = jnp.concatenate([
        jnp.full((H,), 0.5, jnp.float32), jnp.full((H,), 0.5, jnp.float32),
        jnp.ones((H,), jnp.float32), jnp.full((H,), 0.5, jnp.float32)])

    wih_s = w_ih.T * col_scale[None, :]                 # (I, 4H)
    whh_s = w_hh.T * col_scale[None, :]                 # (H, 4H)
    bias_s = (b * col_scale)[None, :]                   # (1, 4H)
    wf_pad = jnp.zeros((H, four_h), jnp.float32).at[:, :n_out].set(w_f.T)
    bf_pad = jnp.zeros((1, four_h), jnp.float32).at[0, :n_out].set(b_f)

    whh_row0 = _round_up(I + 2, 8)                      # keep matmul weights 8-row aligned
    wf_row0 = whh_row0 + H
    rows = wf_row0 + H
    buf = jnp.zeros((rows, four_h), jnp.float32)
    buf = buf.at[0:I, :].set(wih_s)
    buf = buf.at[I:I + 1, :].set(bias_s)
    buf = buf.at[I + 1:I + 2, :].set(bf_pad)
    buf = buf.at[whh_row0:whh_row0 + H, :].set(whh_s)
    buf = buf.at[wf_row0:wf_row0 + H, :].set(wf_pad)
    meta = dict(I=I, H=H, whh_row0=whh_row0, wf_row0=wf_row0, n_out=n_out)
    return buf, meta


def albert_net_forward(seq, params):
    """seq: (T, B, I) float32, time-major (PyTorch nn.LSTM default).
    Returns (B, 2) float32."""
    seq = jnp.asarray(seq, jnp.float32)
    T, B, I = seq.shape
    packed, meta = _pack_params(params)
    H = meta["H"]
    four_h = 4 * H                                   # 128 for H=32 -> lane-dense

    # Batch padding / chunking: grow a chunk to 128 rows (MXU-tall M) before
    # adding grid steps; multiple chunks run as a "parallel" grid axis (v7x).
    B_pad = _round_up(max(B, 8), 8)
    Bc = min(B_pad, 128)
    B_pad = _round_up(B_pad, Bc)
    if B_pad != B:
        seq = jnp.pad(seq, ((0, 0), (0, B_pad - B), (0, 0)))
    n_chunks = B_pad // Bc

    kernel = functools.partial(
        _lstm_head_kernel, T=T, I=I, H=H,
        whh_row0=meta["whh_row0"], wf_row0=meta["wf_row0"])

    out_pad = pl.pallas_call(
        kernel,
        out_shape=jax.ShapeDtypeStruct((B_pad, four_h), jnp.float32),
        grid=(n_chunks,),
        in_specs=[
            pl.BlockSpec((T, Bc, I), lambda b: (0, b, 0)),
            pl.BlockSpec((packed.shape[0], four_h), lambda b: (0, 0)),
        ],
        out_specs=pl.BlockSpec((Bc, four_h), lambda b: (b, 0)),
        compiler_params=pltpu.CompilerParams(
            dimension_semantics=("parallel",)),
    )(seq, packed)
    return out_pad[:B, :meta["n_out"]]


def albert_net_reference(seq, params):
    """Pure-JAX reference of the PyTorch forward (independent of the packing)."""
    w_ih, w_hh = params["w_ih"], params["w_hh"]
    b = params["b_ih"] + params["b_hh"]
    w_f, b_f = params["w_f"], params["b_f"]
    H = w_hh.shape[1]
    T, B, _ = seq.shape
    hi = jax.lax.Precision.HIGHEST
    h = jnp.zeros((B, H), jnp.float32)
    c = jnp.zeros((B, H), jnp.float32)
    for t in range(T):
        z = (jnp.dot(seq[t], w_ih.T, precision=hi)
             + jnp.dot(h, w_hh.T, precision=hi) + b)
        i = jax.nn.sigmoid(z[:, 0 * H:1 * H])
        f = jax.nn.sigmoid(z[:, 1 * H:2 * H])
        g = jnp.tanh(z[:, 2 * H:3 * H])
        o = jax.nn.sigmoid(z[:, 3 * H:4 * H])
        c = f * c + i * g
        h = o * jnp.tanh(c)
    return jnp.dot(jnp.tanh(h), w_f.T, precision=hi) + b_f


if __name__ == "__main__":
    T, B, I, H = 8, 2, 2, 32   # seq_len, batch, input_size, hidden_size

    key = jax.random.PRNGKey(0)
    k_seq, k_par = jax.random.split(key)
    seq = jax.random.normal(k_seq, (T, B, I), jnp.float32)
    params = init_params(k_par, hidden_size=H, input_size=I)

    pred = jax.block_until_ready(albert_net_forward(seq, params))

    ref = albert_net_reference(seq, params)
    np.testing.assert_allclose(np.asarray(pred), np.asarray(ref),
                               rtol=1e-4, atol=1e-4)

    print("KERNEL_OK")
</pallas_src>

<mosaic_0001>
module attributes {stable_mosaic.version = 11 : i64} {
  func.func @_lstm_head_kernel(%arg0: i32, %arg1: memref<8x8x2xf32, #tpu.memory_space<vmem>>, %arg2: memref<72x128xf32, #tpu.memory_space<vmem>>, %arg3: memref<8x128xf32, #tpu.memory_space<vmem>>) attributes {dimension_semantics = [#tpu.dimension_semantics<parallel>], iteration_bounds = array<i64: 1>, scalar_prefetch = 0 : i64, scratch_operands = 0 : i64, tpu.core_type = #tpu.core_type<tc>, window_params = [{transform_indices = @transform_0, window_bounds = array<i64: 8, 8, 2>}, {pipeline_mode = #tpu.pipeline_mode<synchronous>, transform_indices = @transform_1, window_bounds = array<i64: 72, 128>}, {transform_indices = @transform_2, window_bounds = array<i64: 8, 128>}]} {
    %c0 = arith.constant 0 : index
    %c0_0 = arith.constant 0 : index
    %0 = vector.load %arg2[%c0, %c0_0] : memref<72x128xf32, #tpu.memory_space<vmem>>, vector<8x128xf32>
    %1 = vector.extract_strided_slice %0 {offsets = [2, 0], sizes = [1, 128], strides = [1, 1]} : vector<8x128xf32> to vector<1x128xf32>
    %2 = vector.shape_cast %1 : vector<1x128xf32> to vector<1x1x128xf32>
    %3 = vector.extract_strided_slice %0 {offsets = [3, 0], sizes = [1, 128], strides = [1, 1]} : vector<8x128xf32> to vector<1x128xf32>
    %c8 = arith.constant 8 : index
    %c0_1 = arith.constant 0 : index
    %4 = vector.load %arg2[%c8, %c0_1] : memref<72x128xf32, #tpu.memory_space<vmem>>, vector<32x128xf32>
    %c40 = arith.constant 40 : index
    %c0_2 = arith.constant 0 : index
    %5 = vector.load %arg2[%c40, %c0_2] : memref<72x128xf32, #tpu.memory_space<vmem>>, vector<32x128xf32>
    %c0_3 = arith.constant 0 : index
    %c0_4 = arith.constant 0 : index
    %c0_5 = arith.constant 0 : index
    %6 = vector.load %arg1[%c0_3, %c0_4, %c0_5] : memref<8x8x2xf32, #tpu.memory_space<vmem>>, vector<8x8x2xf32>
    %7 = vector.extract_strided_slice %0 {offsets = [0, 0], sizes = [1, 128], strides = [1, 1]} : vector<8x128xf32> to vector<1x128xf32>
    %8 = vector.shape_cast %7 : vector<1x128xf32> to vector<1x1x128xf32>
    %9 = vector.extract_strided_slice %6 {offsets = [0, 0, 0], sizes = [8, 8, 1], strides = [1, 1, 1]} : vector<8x8x2xf32> to vector<8x8x1xf32>
    %10 = vector.broadcast %9 : vector<8x8x1xf32> to vector<8x8x128xf32>
    %11 = vector.broadcast %8 : vector<1x1x128xf32> to vector<8x8x128xf32>
    %12 = arith.mulf %10, %11 : vector<8x8x128xf32>
    %13 = vector.broadcast %2 : vector<1x1x128xf32> to vector<8x8x128xf32>
    %14 = arith.addf %13, %12 : vector<8x8x128xf32>
    %15 = vector.extract_strided_slice %0 {offsets = [1, 0], sizes = [1, 128], strides = [1, 1]} : vector<8x128xf32> to vector<1x128xf32>
    %16 = vector.shape_cast %15 : vector<1x128xf32> to vector<1x1x128xf32>
    %17 = vector.extract_strided_slice %6 {offsets = [0, 0, 1], sizes = [8, 8, 1], strides = [1, 1, 1]} : vector<8x8x2xf32> to vector<8x8x1xf32>
    %18 = vector.broadcast %17 : vector<8x8x1xf32> to vector<8x8x128xf32>
    %19 = vector.broadcast %16 : vector<1x1x128xf32> to vector<8x8x128xf32>
    %20 = arith.mulf %18, %19 : vector<8x8x128xf32>
    %21 = arith.addf %14, %20 : vector<8x8x128xf32>
    %22 = tpu.iota {dimensions = array<i32: 1>} : vector<8x128xi32>
    %c64_i32 = arith.constant 64 : i32
    %23 = vector.broadcast %c64_i32 : i32 to vector<8x128xi32>
    %24 = arith.cmpi sge, %22, %23 : vector<8x128xi32>
    %c96_i32 = arith.constant 96 : i32
    %25 = vector.broadcast %c96_i32 : i32 to vector<8x128xi32>
    %26 = arith.cmpi slt, %22, %25 : vector<8x128xi32>
    %27 = arith.andi %24, %26 : vector<8x128xi1>
    %cst = arith.constant 1.000000e+00 : f32
    %cst_6 = arith.constant 5.000000e-01 : f32
    %28 = vector.broadcast %cst : f32 to vector<8x128xf32>
    %29 = vector.broadcast %cst_6 : f32 to vector<8x128xf32>
    %30 = arith.select %27, %28, %29 : vector<8x128xi1>, vector<8x128xf32>
    %cst_7 = arith.constant 0.000000e+00 : f32
    %cst_8 = arith.constant 5.000000e-01 : f32
    %31 = vector.broadcast %cst_7 : f32 to vector<8x128xf32>
    %32 = vector.broadcast %cst_8 : f32 to vector<8x128xf32>
    %33 = arith.select %27, %31, %32 : vector<8x128xi1>, vector<8x128xf32>
    %cst_9 = arith.constant 0.000000e+00 : f32
    %34 = vector.broadcast %cst_9 : f32 to vector<8x32xf32>
    %cst_10 = arith.constant 0.000000e+00 : f32
    %35 = vector.broadcast %cst_10 : f32 to vector<8x32xf32>
    %36 = vector.extract_strided_slice %21 {offsets = [0, 0, 0], sizes = [1, 8, 128], strides = [1, 1, 1]} : vector<8x8x128xf32> to vector<1x8x128xf32>
    %37 = vector.shape_cast %36 : vector<1x8x128xf32> to vector<8x128xf32>
    %cst_11 = arith.constant dense<0.000000e+00> : vector<8x128xf32>
    %38 = tpu.matmul %34, %4, %cst_11 {dimension_numbers = #tpu.dot_dimension_numbers<[1], [0], [0], [1], [0, 0, 1, 1], [], []>} : vector<8x32xf32>, vector<32x128xf32>, vector<8x128xf32> -> vector<8x128xf32>
    %39 = arith.addf %37, %38 : vector<8x128xf32>
    %40 = math.tanh %39 : vector<8x128xf32>
    %41 = arith.mulf %40, %30 : vector<8x128xf32>
    %42 = arith.addf %41, %33 : vector<8x128xf32>
    %c64_i32_12 = arith.constant 64 : i32
    %43 = tpu.dynamic_rotate %42 by %c64_i32_12 dim 1 : vector<8x128xf32>, i32 -> vector<8x128xf32>
    %44 = vector.extract_strided_slice %42 {offsets = [0, 0], sizes = [8, 32], strides = [1, 1]} : vector<8x128xf32> to vector<8x32xf32>
    %45 = vector.extract_strided_slice %43 {offsets = [0, 0], sizes = [8, 32], strides = [1, 1]} : vector<8x128xf32> to vector<8x32xf32>
    %46 = arith.mulf %44, %45 : vector<8x32xf32>
    %47 = vector.extract_strided_slice %42 {offsets = [0, 32], sizes = [8, 32], strides = [1, 1]} : vector<8x128xf32> to vector<8x32xf32>
    %48 = arith.mulf %47, %35 : vector<8x32xf32>
    %49 = arith.addf %48, %46 : vector<8x32xf32>
    %50 = vector.extract_strided_slice %43 {offsets = [0, 32], sizes = [8, 32], strides = [1, 1]} : vector<8x128xf32> to vector<8x32xf32>
    %51 = math.tanh %49 : vector<8x32xf32>
    %52 = arith.mulf %50, %51 : vector<8x32xf32>
    %53 = vector.extract_strided_slice %21 {offsets = [1, 0, 0], sizes = [1, 8, 128], strides = [1, 1, 1]} : vector<8x8x128xf32> to vector<1x8x128xf32>
    %54 = vector.shape_cast %53 : vector<1x8x128xf32> to vector<8x128xf32>
    %cst_13 = arith.constant dense<0.000000e+00> : vector<8x128xf32>
    %55 = tpu.matmul %52, %4, %cst_13 {dimension_numbers = #tpu.dot_dimension_numbers<[1], [0], [0], [1], [0, 0, 1, 1], [], []>} : vector<8x32xf32>, vector<32x128xf32>, vector<8x128xf32> -> vector<8x128xf32>
    %56 = arith.addf %54, %55 : vector<8x128xf32>
    %57 = math.tanh %56 : vector<8x128xf32>
    %58 = arith.mulf %57, %30 : vector<8x128xf32>
    %59 = arith.addf %58, %33 : vector<8x128xf32>
    %c64_i32_14 = arith.constant 64 : i32
    %60 = tpu.dynamic_rotate %59 by %c64_i32_14 dim 1 : vector<8x128xf32>, i32 -> vector<8x128xf32>
    %61 = vector.extract_strided_slice %59 {offsets = [0, 0], sizes = [8, 32], strides = [1, 1]} : vector<8x128xf32> to vector<8x32xf32>
    %62 = vector.extract_strided_slice %60 {offsets = [0, 0], sizes = [8, 32], strides = [1, 1]} : vector<8x128xf32> to vector<8x32xf32>
    %63 = arith.mulf %61, %62 : vector<8x32xf32>
    %64 = vector.extract_strided_slice %59 {offsets = [0, 32], sizes = [8, 32], strides = [1, 1]} : vector<8x128xf32> to vector<8x32xf32>
    %65 = arith.mulf %64, %49 : vector<8x32xf32>
    %66 = arith.addf %65, %63 : vector<8x32xf32>
    %67 = vector.extract_strided_slice %60 {offsets = [0, 32], sizes = [8, 32], strides = [1, 1]} : vector<8x128xf32> to vector<8x32xf32>
    %68 = math.tanh %66 : vector<8x32xf32>
    %69 = arith.mulf %67, %68 : vector<8x32xf32>
    %70 = vector.extract_strided_slice %21 {offsets = [2, 0, 0], sizes = [1, 8, 128], strides = [1, 1, 1]} : vector<8x8x128xf32> to vector<1x8x128xf32>
    %71 = vector.shape_cast %70 : vector<1x8x128xf32> to vector<8x128xf32>
    %cst_15 = arith.constant dense<0.000000e+00> : vector<8x128xf32>
    %72 = tpu.matmul %69, %4, %cst_15 {dimension_numbers = #tpu.dot_dimension_numbers<[1], [0], [0], [1], [0, 0, 1, 1], [], []>} : vector<8x32xf32>, vector<32x128xf32>, vector<8x128xf32> -> vector<8x128xf32>
    %73 = arith.addf %71, %72 : vector<8x128xf32>
    %74 = math.tanh %73 : vector<8x128xf32>
    %75 = arith.mulf %74, %30 : vector<8x128xf32>
    %76 = arith.addf %75, %33 : vector<8x128xf32>
    %c64_i32_16 = arith.constant 64 : i32
    %77 = tpu.dynamic_rotate %76 by %c64_i32_16 dim 1 : vector<8x128xf32>, i32 -> vector<8x128xf32>
    %78 = vector.extract_strided_slice %76 {offsets = [0, 0], sizes = [8, 32], strides = [1, 1]} : vector<8x128xf32> to vector<8x32xf32>
    %79 = vector.extract_strided_slice %77 {offsets = [0, 0], sizes = [8, 32], strides = [1, 1]} : vector<8x128xf32> to vector<8x32xf32>
    %80 = arith.mulf %78, %79 : vector<8x32xf32>
    %81 = vector.extract_strided_slice %76 {offsets = [0, 32], sizes = [8, 32], strides = [1, 1]} : vector<8x128xf32> to vector<8x32xf32>
    %82 = arith.mulf %81, %66 : vector<8x32xf32>
    %83 = arith.addf %82, %80 : vector<8x32xf32>
    %84 = vector.extract_strided_slice %77 {offsets = [0, 32], sizes = [8, 32], strides = [1, 1]} : vector<8x128xf32> to vector<8x32xf32>
    %85 = math.tanh %83 : vector<8x32xf32>
    %86 = arith.mulf %84, %85 : vector<8x32xf32>
    %87 = vector.extract_strided_slice %21 {offsets = [3, 0, 0], sizes = [1, 8, 128], strides = [1, 1, 1]} : vector<8x8x128xf32> to vector<1x8x128xf32>
    %88 = vector.shape_cast %87 : vector<1x8x128xf32> to vector<8x128xf32>
    %cst_17 = arith.constant dense<0.000000e+00> : vector<8x128xf32>
    %89 = tpu.matmul %86, %4, %cst_17 {dimension_numbers = #tpu.dot_dimension_numbers<[1], [0], [0], [1], [0, 0, 1, 1], [], []>} : vector<8x32xf32>, vector<32x128xf32>, vector<8x128xf32> -> vector<8x128xf32>
    %90 = arith.addf %88, %89 : vector<8x128xf32>
    %91 = math.tanh %90 : vector<8x128xf32>
    %92 = arith.mulf %91, %30 : vector<8x128xf32>
    %93 = arith.addf %92, %33 : vector<8x128xf32>
    %c64_i32_18 = arith.constant 64 : i32
    %94 = tpu.dynamic_rotate %93 by %c64_i32_18 dim 1 : vector<8x128xf32>, i32 -> vector<8x128xf32>
    %95 = vector.extract_strided_slice %93 {offsets = [0, 0], sizes = [8, 32], strides = [1, 1]} : vector<8x128xf32> to vector<8x32xf32>
    %96 = vector.extract_strided_slice %94 {offsets = [0, 0], sizes = [8, 32], strides = [1, 1]} : vector<8x128xf32> to vector<8x32xf32>
    %97 = arith.mulf %95, %96 : vector<8x32xf32>
    %98 = vector.extract_strided_slice %93 {offsets = [0, 32], sizes = [8, 32], strides = [1, 1]} : vector<8x128xf32> to vector<8x32xf32>
    %99 = arith.mulf %98, %83 : vector<8x32xf32>
    %100 = arith.addf %99, %97 : vector<8x32xf32>
    %101 = vector.extract_strided_slice %94 {offsets = [0, 32], sizes = [8, 32], strides = [1, 1]} : vector<8x128xf32> to vector<8x32xf32>
    %102 = math.tanh %100 : vector<8x32xf32>
    %103 = arith.mulf %101, %102 : vector<8x32xf32>
    %104 = vector.extract_strided_slice %21 {offsets = [4, 0, 0], sizes = [1, 8, 128], strides = [1, 1, 1]} : vector<8x8x128xf32> to vector<1x8x128xf32>
    %105 = vector.shape_cast %104 : vector<1x8x128xf32> to vector<8x128xf32>
    %cst_19 = arith.constant dense<0.000000e+00> : vector<8x128xf32>
    %106 = tpu.matmul %103, %4, %cst_19 {dimension_numbers = #tpu.dot_dimension_numbers<[1], [0], [0], [1], [0, 0, 1, 1], [], []>} : vector<8x32xf32>, vector<32x128xf32>, vector<8x128xf32> -> vector<8x128xf32>
    %107 = arith.addf %105, %106 : vector<8x128xf32>
    %108 = math.tanh %107 : vector<8x128xf32>
    %109 = arith.mulf %108, %30 : vector<8x128xf32>
    %110 = arith.addf %109, %33 : vector<8x128xf32>
    %c64_i32_20 = arith.constant 64 : i32
    %111 = tpu.dynamic_rotate %110 by %c64_i32_20 dim 1 : vector<8x128xf32>, i32 -> vector<8x128xf32>
    %112 = vector.extract_strided_slice %110 {offsets = [0, 0], sizes = [8, 32], strides = [1, 1]} : vector<8x128xf32> to vector<8x32xf32>
    %113 = vector.extract_strided_slice %111 {offsets = [0, 0], sizes = [8, 32], strides = [1, 1]} : vector<8x128xf32> to vector<8x32xf32>
    %114 = arith.mulf %112, %113 : vector<8x32xf32>
    %115 = vector.extract_strided_slice %110 {offsets = [0, 32], sizes = [8, 32], strides = [1, 1]} : vector<8x128xf32> to vector<8x32xf32>
    %116 = arith.mulf %115, %100 : vector<8x32xf32>
    %117 = arith.addf %116, %114 : vector<8x32xf32>
    %118 = vector.extract_strided_slice %111 {offsets = [0, 32], sizes = [8, 32], strides = [1, 1]} : vector<8x128xf32> to vector<8x32xf32>
    %119 = math.tanh %117 : vector<8x32xf32>
    %120 = arith.mulf %118, %119 : vector<8x32xf32>
    %121 = vector.extract_strided_slice %21 {offsets = [5, 0, 0], sizes = [1, 8, 128], strides = [1, 1, 1]} : vector<8x8x128xf32> to vector<1x8x128xf32>
    %122 = vector.shape_cast %121 : vector<1x8x128xf32> to vector<8x128xf32>
    %cst_21 = arith.constant dense<0.000000e+00> : vector<8x128xf32>
    %123 = tpu.matmul %120, %4, %cst_21 {dimension_numbers = #tpu.dot_dimension_numbers<[1], [0], [0], [1], [0, 0, 1, 1], [], []>} : vector<8x32xf32>, vector<32x128xf32>, vector<8x128xf32> -> vector<8x128xf32>
    %124 = arith.addf %122, %123 : vector<8x128xf32>
    %125 = math.tanh %124 : vector<8x128xf32>
    %126 = arith.mulf %125, %30 : vector<8x128xf32>
    %127 = arith.addf %126, %33 : vector<8x128xf32>
    %c64_i32_22 = arith.constant 64 : i32
    %128 = tpu.dynamic_rotate %127 by %c64_i32_22 dim 1 : vector<8x128xf32>, i32 -> vector<8x128xf32>
    %129 = vector.extract_strided_slice %127 {offsets = [0, 0], sizes = [8, 32], strides = [1, 1]} : vector<8x128xf32> to vector<8x32xf32>
    %130 = vector.extract_strided_slice %128 {offsets = [0, 0], sizes = [8, 32], strides = [1, 1]} : vector<8x128xf32> to vector<8x32xf32>
    %131 = arith.mulf %129, %130 : vector<8x32xf32>
    %132 = vector.extract_strided_slice %127 {offsets = [0, 32], sizes = [8, 32], strides = [1, 1]} : vector<8x128xf32> to vector<8x32xf32>
    %133 = arith.mulf %132, %117 : vector<8x32xf32>
    %134 = arith.addf %133, %131 : vector<8x32xf32>
    %135 = vector.extract_strided_slice %128 {offsets = [0, 32], sizes = [8, 32], strides = [1, 1]} : vector<8x128xf32> to vector<8x32xf32>
    %136 = math.tanh %134 : vector<8x32xf32>
    %137 = arith.mulf %135, %136 : vector<8x32xf32>
    %138 = vector.extract_strided_slice %21 {offsets = [6, 0, 0], sizes = [1, 8, 128], strides = [1, 1, 1]} : vector<8x8x128xf32> to vector<1x8x128xf32>
    %139 = vector.shape_cast %138 : vector<1x8x128xf32> to vector<8x128xf32>
    %cst_23 = arith.constant dense<0.000000e+00> : vector<8x128xf32>
    %140 = tpu.matmul %137, %4, %cst_23 {dimension_numbers = #tpu.dot_dimension_numbers<[1], [0], [0], [1], [0, 0, 1, 1], [], []>} : vector<8x32xf32>, vector<32x128xf32>, vector<8x128xf32> -> vector<8x128xf32>
    %141 = arith.addf %139, %140 : vector<8x128xf32>
    %142 = math.tanh %141 : vector<8x128xf32>
    %143 = arith.mulf %142, %30 : vector<8x128xf32>
    %144 = arith.addf %143, %33 : vector<8x128xf32>
    %c64_i32_24 = arith.constant 64 : i32
    %145 = tpu.dynamic_rotate %144 by %c64_i32_24 dim 1 : vector<8x128xf32>, i32 -> vector<8x128xf32>
    %146 = vector.extract_strided_slice %144 {offsets = [0, 0], sizes = [8, 32], strides = [1, 1]} : vector<8x128xf32> to vector<8x32xf32>
    %147 = vector.extract_strided_slice %145 {offsets = [0, 0], sizes = [8, 32], strides = [1, 1]} : vector<8x128xf32> to vector<8x32xf32>
    %148 = arith.mulf %146, %147 : vector<8x32xf32>
    %149 = vector.extract_strided_slice %144 {offsets = [0, 32], sizes = [8, 32], strides = [1, 1]} : vector<8x128xf32> to vector<8x32xf32>
    %150 = arith.mulf %149, %134 : vector<8x32xf32>
    %151 = arith.addf %150, %148 : vector<8x32xf32>
    %152 = vector.extract_strided_slice %145 {offsets = [0, 32], sizes = [8, 32], strides = [1, 1]} : vector<8x128xf32> to vector<8x32xf32>
    %153 = math.tanh %151 : vector<8x32xf32>
    %154 = arith.mulf %152, %153 : vector<8x32xf32>
    %155 = vector.extract_strided_slice %21 {offsets = [7, 0, 0], sizes = [1, 8, 128], strides = [1, 1, 1]} : vector<8x8x128xf32> to vector<1x8x128xf32>
    %156 = vector.shape_cast %155 : vector<1x8x128xf32> to vector<8x128xf32>
    %cst_25 = arith.constant dense<0.000000e+00> : vector<8x128xf32>
    %157 = tpu.matmul %154, %4, %cst_25 {dimension_numbers = #tpu.dot_dimension_numbers<[1], [0], [0], [1], [0, 0, 1, 1], [], []>} : vector<8x32xf32>, vector<32x128xf32>, vector<8x128xf32> -> vector<8x128xf32>
    %158 = arith.addf %156, %157 : vector<8x128xf32>
    %159 = math.tanh %158 : vector<8x128xf32>
    %160 = arith.mulf %159, %30 : vector<8x128xf32>
    %161 = arith.addf %160, %33 : vector<8x128xf32>
    %c64_i32_26 = arith.constant 64 : i32
    %162 = tpu.dynamic_rotate %161 by %c64_i32_26 dim 1 : vector<8x128xf32>, i32 -> vector<8x128xf32>
    %163 = vector.extract_strided_slice %161 {offsets = [0, 0], sizes = [8, 32], strides = [1, 1]} : vector<8x128xf32> to vector<8x32xf32>
    %164 = vector.extract_strided_slice %162 {offsets = [0, 0], sizes = [8, 32], strides = [1, 1]} : vector<8x128xf32> to vector<8x32xf32>
    %165 = arith.mulf %163, %164 : vector<8x32xf32>
    %166 = vector.extract_strided_slice %161 {offsets = [0, 32], sizes = [8, 32], strides = [1, 1]} : vector<8x128xf32> to vector<8x32xf32>
    %167 = arith.mulf %166, %151 : vector<8x32xf32>
    %168 = arith.addf %167, %165 : vector<8x32xf32>
    %169 = vector.extract_strided_slice %162 {offsets = [0, 32], sizes = [8, 32], strides = [1, 1]} : vector<8x128xf32> to vector<8x32xf32>
    %170 = math.tanh %168 : vector<8x32xf32>
    %171 = arith.mulf %169, %170 : vector<8x32xf32>
    %172 = math.tanh %171 : vector<8x32xf32>
    %cst_27 = arith.constant dense<0.000000e+00> : vector<8x128xf32>
    %173 = tpu.matmul %172, %5, %cst_27 {dimension_numbers = #tpu.dot_dimension_numbers<[1], [0], [0], [1], [0, 0, 1, 1], [], []>} : vector<8x32xf32>, vector<32x128xf32>, vector<8x128xf32> -> vector<8x128xf32>
    %174 = vector.broadcast %3 : vector<1x128xf32> to vector<8x128xf32>
    %175 = arith.addf %173, %174 : vector<8x128xf32>
    %c0_28 = arith.constant 0 : index
    %c0_29 = arith.constant 0 : index
    %176 = vector.load %arg3[%c0_28, %c0_29] : memref<8x128xf32, #tpu.memory_space<vmem>>, vector<8x128xf32>
    tpu.vector_store %arg3[%c0_28, %c0_29], %175 {strides = array<i32>} : memref<8x128xf32, #tpu.memory_space<vmem>>, vector<8x128xf32>,
    return
  }
  func.func @transform_0(%arg0: i32) -> (i32, i32, i32) {
    %c0_i32 = arith.constant 0 : i32
    %c0_i32_0 = arith.constant 0 : i32
    %c0_i32_1 = arith.constant 0 : i32
    return %c0_i32, %arg0, %c0_i32_0 : i32, i32, i32
  }
  func.func @transform_1(%arg0: i32) -> (i32, i32) {
    %c0_i32 = arith.constant 0 : i32
    %c0_i32_0 = arith.constant 0 : i32
    %c0_i32_1 = arith.constant 0 : i32
    return %c0_i32, %c0_i32_0 : i32, i32
  }
  func.func @transform_2(%arg0: i32) -> (i32, i32) {
    %c0_i32 = arith.constant 0 : i32
    %c0_i32_0 = arith.constant 0 : i32
    return %arg0, %c0_i32 : i32, i32
  }
}

</mosaic_0001>

<bundles_post_ra>
// kernel: tpu_custom_call.1
= control target key start
LH: loop header
LB: loop body
LE: loop exit
PB: predicated region body
PF: predicated region fallthrough
CT: control target
= control target key end

     0   :  { %v1250_v3 = vmov 0.0|0.0   ;;  %vm1251_vm0 = vmmov 0   ;;  %v1252_v6 = vmov 0.0   ;;  %s1499_s0 = inlined_call_operand.vmem [shape: f32[8,8,2], index: 0, kind: input, shape index: {}]   ;;  %s1500_s1 = inlined_call_operand.vmem [shape: f32[72,128], index: 1, kind: input, shape index: {}]   ;;  %s1501_s2 = inlined_call_operand.hbm [shape: f32[8,128], index: 2, kind: output, shape index: {}]  }
   0x1   :  { %v13_v0 = vld [vmem:[%s1500_s1 + $0x8] sm:$0xff]  ;;  %v14_v1 = vld [vmem:[%s1500_s1 + $0x10] sm:$0xff]  ;;  %v15_v2 = vld [vmem:[%s1500_s1 + $0x18] sm:$0xff]  ;;  %1118 = vmatprep.subr.bf16.mxu0 %v1250_v3  ;;  %1027 = vmatprep.mubr.msk.f32.mxu0 %vm1251_vm0, %v1252_v6 }
   0x2   :  { %v1285_v4 = vpack.c.bf16 %v14_v1, %v13_v0  ;;  %v16_v5 = vld [vmem:[%s1500_s1 + $0x20] sm:$0xff] }
   0x3   :  { %v21_v7 = vld [vmem:[%s1499_s0] sm:$0xff] }
   0x4   :  { %7 = vsyncpa [#allocation3], 0  ;;  %v1253_v8 = vmov 0   ;;  %1124 = vmatprep.subr.bf16.mxu1 %v1250_v3  ;;  %1120 = vmatpush3.bf16.msra.mxu0 %v1285_v4  ;;  %v1298_v9 = vpack.c.bf16 %v16_v5, %v15_v2  ;;  %v1254_v10 = vmov 1   ;;  %v69_v11 = vlaneseq  ;;  %v1325_v14 = vld [vmem:[%s1500_s1] sm:$0xff]  ;;  %s1256_s21 = smov 64  }
   0x5   :  { %1182 = vset.pattern.permute.xlu0 %v1253_v8  ;;  %1121 = vmatprep.subr.bf16.mxu0 %v1250_v3  ;;  %v1255_v30 = vmov 0.5   ;;  %s1257_s22 = smov 32   ;;  %v22_v41 = vld [vmem:[%s1499_s0 + $0x8] sm:$0xff]  ;;  %s1258_s25 = smov 96   ;;  %vm152_vm4 = vcmask 261120   ;;  %v23_v59 = vld [vmem:[%s1499_s0 + $0x10] sm:$0xff] }
   0x6   :  { %31 = vperm.xlu0 %1182, %v21_v7   ;;  %1126 = vmatpush3.bf16.msra.mxu1 %v1285_v4  ;;  %v1319_v12 = vshrl.u32 %v69_v11, 7  ;;  %v146_v29 = vand.u32 127, %v69_v11 }
   0x7   :  { %1127 = vmatprep.subr.bf16.mxu1 %v1250_v3  ;;  %1038 = vmatprep.mubr.msk.f32.mxu1 %vm1251_vm0, %v1252_v6 }
   0x8   :  { %1185 = vset.pattern.permute.xlu1 %v1254_v10  ;;  %1123 = vmatpush3.bf16.msra.mxu0 %v1298_v9  ;;  %v71_v13 = vsub.s32 0, %v1319_v12  ;;  %v83_v16 = vsub.s32 2, %v1319_v12  ;;  %v127_v18 = vsub.s32 1, %v1319_v12  ;;  %vm147_vm1 = vcmp.ge.s32.totalorder %v146_v29, 64 }
   0x9   :  { %1130 = vmatprep.subr.bf16.mxu0 %v1250_v3  ;;  %vm148_vm2 = vcmp.lt.s32.totalorder %v146_v29, 96 }
   0xa   :  { %1183 = vset.pattern.permute.xlu0 %v1254_v10  ;;  %1129 = vmatpush3.bf16.msra.mxu1 %v1298_v9  ;;  %v1329_v17 = vrot.slane %v1325_v14, %v71_v13  ;;  %v1334_v20 = vrot.slane %v1325_v14, %v83_v16  ;;  %v1337_v21 = vrot.slane %v1325_v14, %v127_v18  ;;  %vm149_vm3 = vmand %vm147_vm1, %vm148_vm2 }
   0xb   :  { %94 = vperm.xlu0 %1183, %v21_v7   ;;  %1136 = vmatprep.subr.bf16.mxu1 %v1250_v3  ;;  %v1341_v31 = vsel %vm149_vm3, 1.0, %v1255_v30  ;;  %v1343_v33 = vsel %vm149_vm3, 0.0, %v1255_v30  ;;  %v24_v30 = vld [vmem:[%s1499_s0 + $0x18] sm:$0xff] }
   0xc   :  { %1028 = vmatmul.mubr.f32.vlgmr.msra.gmra.mrb[0].mxu0 %v1252_v6 }
   0xd   :  { %1132 = vmatpush3.bf16.msra.mxu0 %v1285_v4  ;;  %1049 = vmatprep.mubr.msk.f32.mxu0 %vm1251_vm0, %v1252_v6 }
   0xe   :  { %1133 = vmatprep.subr.bf16.mxu0 %v1250_v3 }
   0xf   :  { %1184 = vset.pattern.permute.xlu0 %v1253_v8 }
  0x10   :  { %36 = vperm.xlu0 %1184, %v22_v41  }
  0x11   :  { %1135 = vmatpush3.bf16.msra.mxu0 %v1298_v9 }
  0x12   :  { %1142 = vmatprep.subr.bf16.mxu0 %v1250_v3 }
  0x85   :  { %v32_v15 = vpop.permute.xlu0 %31 }
  0x86   :  { %v73_v19 = vmul.f32 %v1329_v17, %v32_v15 }
  0x88   :  { %v85_v23 = vadd.f32 %v1334_v20, %v73_v19 }
  0x8a   :  { %v95_v22 = vpop.permute.xlu0 %94 }
  0x8b   :  { %v129_v24 = vmul.f32 %v1337_v21, %v95_v22 }
  0x8d   :  { %v137_v25 = vadd.f32 %v129_v24, %v85_v23 }
  0x8f   :  { %v37_v45 = vpop.permute.xlu0 %36 }
  0x90   :  { %v74_v46 = vmul.f32 %v1329_v17, %v37_v45 }
  0x92   :  { %v86_v48 = vadd.f32 %v1334_v20, %v74_v46 }
  0xdf   :  { %v222_v26 = vpop.f32.mrb[0].mxu0 }
  0xe0   :  { %v226_v27 = vadd.f32 %v222_v26, %v137_v25  ;;  %v1029_v28 = vpop.f32.mrb[1].mxu0 }
  0xe2   :  { %1192 = vtanh.f32 %v226_v27 }
  0xec   :  { %v1193_v32 = vpop.eup %1192 }
  0xed   :  { %v228_v34 = vmul.f32 %v1193_v32, %v1341_v31 }
  0xef   :  { %v229_v35 = vadd.f32 %v228_v34, %v1343_v33 }
  0xf1   :  { %230 = vrot.lane.b32.xlu1 %v229_v35, %s1256_s21  ;;  %v233_v38 = vmul.f32 0.0, %v229_v35 }
 0x163   :  { %v231_v36 = vpop.permute.xlu1 %230 }
 0x164   :  { %v232_v37 = vmul.f32 %v231_v36, %v229_v35 }
 0x166   :  { %235 = vrot.lane.b32.xlu1 %v232_v37, %s1257_s22 }
 0x1d8   :  { %v236_v39 = vpop.permute.xlu1 %235 }
 0x1d9   :  { %v238_v40 = vadd.f32 %v236_v39, %v233_v38 }
 0x1db   :  { %1194 = vtanh.f32 %v238_v40 }
 0x1e5   :  { %v1195_v42 = vpop.eup %1194 }
 0x1e6   :  { %v240_v43 = vmul.f32 %v1195_v42, %v231_v36 }
 0x1e8   :  { %242 = vrot.lane.b32.xlu1 %v240_v43, %s1258_s25 }
 0x1ec   :  { %98 = vperm.xlu1 %1185, %v22_v41  }
 0x25a   :  { %v243_v44 = vpop.permute.xlu1 %242 }
 0x25b   :  { %1039 = vmatmul.mubr.msk.f32.vlgmr.msra.gmra.mrb[0].mxu1 %vm152_vm4, %v243_v44 }
 0x25c   :  { %1138 = vmatpush3.bf16.msra.mxu1 %v1285_v4  ;;  %1060 = vmatprep.mubr.msk.f32.mxu1 %vm1251_vm0, %v1252_v6 }
 0x25d   :  { %1139 = vmatprep.subr.bf16.mxu1 %v1250_v3 }
 0x260   :  { %1141 = vmatpush3.bf16.msra.mxu1 %v1298_v9 }
 0x261   :  { %1148 = vmatprep.subr.bf16.mxu1 %v1250_v3 }
 0x26b   :  { %v99_v47 = vpop.permute.xlu1 %98 }
 0x26c   :  { %v130_v49 = vmul.f32 %v1337_v21, %v99_v47 }
 0x26e   :  { %v138_v50 = vadd.f32 %v130_v49, %v86_v48 }
 0x32e   :  { %v312_v51 = vpop.f32.mrb[0].mxu1 }
 0x32f   :  { %v316_v52 = vadd.f32 %v312_v51, %v138_v50  ;;  %v1040_v53 = vpop.f32.mrb[1].mxu1  ;;  %v25_v50 = vld [vmem:[%s1499_s0 + $0x20] sm:$0xff] }
 0x331   :  { %1196 = vtanh.f32 %v316_v52 }
 0x33b   :  { %v1197_v54 = vpop.eup %1196 }
 0x33c   :  { %v318_v55 = vmul.f32 %v1197_v54, %v1341_v31 }
 0x33e   :  { %v319_v56 = vadd.f32 %v318_v55, %v1343_v33 }
 0x340   :  { %320 = vrot.lane.b32.xlu1 %v319_v56, %s1256_s21  ;;  %v323_v60 = vmul.f32 %v319_v56, %v238_v40 }
 0x3b2   :  { %v321_v57 = vpop.permute.xlu1 %320 }
 0x3b3   :  { %v322_v58 = vmul.f32 %v321_v57, %v319_v56 }
 0x3b5   :  { %325 = vrot.lane.b32.xlu0 %v322_v58, %s1257_s22 }
 0x3b9   :  { %41 = vperm.xlu0 %1184, %v23_v59  }
 0x3bd   :  { %1187 = vset.pattern.permute.xlu0 %v1254_v10 }
 0x427   :  { %v326_v61 = vpop.permute.xlu0 %325 }
 0x428   :  { %v328_v62 = vadd.f32 %v326_v61, %v323_v60 }
 0x42a   :  { %1198 = vtanh.f32 %v328_v62 }
 0x434   :  { %v1199_v63 = vpop.eup %1198 }
 0x435   :  { %v330_v0 = vmul.f32 %v1199_v63, %v321_v57 }
 0x437   :  { %332 = vrot.lane.b32.xlu1 %v330_v0, %s1258_s25 }
 0x438   :  { %v42_v2 = vpop.permute.xlu0 %41 }
 0x439   :  { %v75_v7 = vmul.f32 %v1329_v17, %v42_v2 }
 0x43b   :  { %102 = vperm.xlu1 %1185, %v23_v59   ;;  %v87_v13 = vadd.f32 %v1334_v20, %v75_v7 }
 0x43f   :  { %1186 = vset.pattern.permute.xlu1 %v1253_v8 }
 0x4a9   :  { %v333_v1 = vpop.permute.xlu1 %332 }
 0x4aa   :  { %1050 = vmatmul.mubr.msk.f32.vlgmr.msra.gmra.mrb[2].mxu0 %vm152_vm4, %v333_v1 }
 0x4ab   :  { %1144 = vmatpush3.bf16.msra.mxu0 %v1285_v4  ;;  %1071 = vmatprep.mubr.msk.f32.mxu0 %vm1251_vm0, %v1252_v6 }
 0x4ac   :  { %1145 = vmatprep.subr.bf16.mxu0 %v1250_v3 }
 0x4af   :  { %1147 = vmatpush3.bf16.msra.mxu0 %v1298_v9 }
 0x4b0   :  { %1154 = vmatprep.subr.bf16.mxu0 %v1250_v3 }
 0x4ba   :  { %v103_v5 = vpop.permute.xlu1 %102 }
 0x4bb   :  { %v131_v11 = vmul.f32 %v1337_v21, %v103_v5 }
 0x4bd   :  { %v139_v15 = vadd.f32 %v131_v11, %v87_v13 }
 0x57d   :  { %v402_v16 = vpop.f32.mrb[2].mxu0 }
 0x57e   :  { %v406_v18 = vadd.f32 %v402_v16, %v139_v15  ;;  %v1051_v19 = vpop.f32.mrb[3].mxu0 }
 0x57f   :  { %v26_v19 = vld [vmem:[%s1499_s0 + $0x28] sm:$0xff] }
 0x580   :  { %1200 = vtanh.f32 %v406_v18 }
 0x58a   :  { %v1201_v22 = vpop.eup %1200 }
 0x58b   :  { %v408_v23 = vmul.f32 %v1201_v22, %v1341_v31 }
 0x58d   :  { %v409_v24 = vadd.f32 %v408_v23, %v1343_v33 }
 0x58f   :  { %410 = vrot.lane.b32.xlu0 %v409_v24, %s1256_s21  ;;  %v413_v27 = vmul.f32 %v409_v24, %v328_v62 }
 0x601   :  { %v411_v25 = vpop.permute.xlu0 %410 }
 0x602   :  { %v412_v26 = vmul.f32 %v411_v25, %v409_v24 }
 0x604   :  { %415 = vrot.lane.b32.xlu1 %v412_v26, %s1257_s22 }
 0x608   :  { %46 = vperm.xlu1 %1186, %v24_v30  }
 0x676   :  { %v416_v28 = vpop.permute.xlu1 %415 }
 0x677   :  { %v418_v29 = vadd.f32 %v416_v28, %v413_v27 }
 0x679   :  { %1202 = vtanh.f32 %v418_v29 }
 0x683   :  { %v1203_v32 = vpop.eup %1202 }
 0x684   :  { %v420_v34 = vmul.f32 %v1203_v32, %v411_v25 }
 0x686   :  { %422 = vrot.lane.b32.xlu0 %v420_v34, %s1258_s25 }
 0x687   :  { %v47_v36 = vpop.permute.xlu1 %46 }
 0x688   :  { %v76_v37 = vmul.f32 %v1329_v17, %v47_v36 }
 0x68a   :  { %106 = vperm.xlu0 %1187, %v24_v30   ;;  %v88_v39 = vadd.f32 %v1334_v20, %v76_v37 }
 0x6f8   :  { %v423_v35 = vpop.permute.xlu0 %422 }
 0x6f9   :  { %1061 = vmatmul.mubr.msk.f32.vlgmr.msra.gmra.mrb[2].mxu1 %vm152_vm4, %v423_v35 }
 0x6fa   :  { %1150 = vmatpush3.bf16.msra.mxu1 %v1285_v4  ;;  %1082 = vmatprep.mubr.msk.f32.mxu1 %vm1251_vm0, %v1252_v6 }
 0x6fb   :  { %1151 = vmatprep.subr.bf16.mxu1 %v1250_v3 }
 0x6fe   :  { %1153 = vmatpush3.bf16.msra.mxu1 %v1298_v9 }
 0x6ff   :  { %1160 = vmatprep.subr.bf16.mxu1 %v1250_v3 }
 0x709   :  { %v107_v38 = vpop.permute.xlu0 %106 }
 0x70a   :  { %v132_v40 = vmul.f32 %v1337_v21, %v107_v38 }
 0x70c   :  { %v140_v41 = vadd.f32 %v132_v40, %v88_v39  ;;  %v27_v39 = vld [vmem:[%s1499_s0 + $0x30] sm:$0xff] }
 0x7cc   :  { %v492_v42 = vpop.f32.mrb[2].mxu1 }
 0x7cd   :  { %v496_v43 = vadd.f32 %v492_v42, %v140_v41  ;;  %v1062_v44 = vpop.f32.mrb[3].mxu1 }
 0x7cf   :  { %1204 = vtanh.f32 %v496_v43 }
 0x7d9   :  { %v1205_v45 = vpop.eup %1204 }
 0x7da   :  { %v498_v46 = vmul.f32 %v1205_v45, %v1341_v31 }
 0x7dc   :  { %v499_v47 = vadd.f32 %v498_v46, %v1343_v33 }
 0x7de   :  { %500 = vrot.lane.b32.xlu1 %v499_v47, %s1256_s21  ;;  %v503_v51 = vmul.f32 %v499_v47, %v418_v29 }
 0x850   :  { %v501_v48 = vpop.permute.xlu1 %500 }
 0x851   :  { %v502_v49 = vmul.f32 %v501_v48, %v499_v47 }
 0x853   :  { %505 = vrot.lane.b32.xlu1 %v502_v49, %s1257_s22 }
 0x857   :  { %51 = vperm.xlu1 %1186, %v25_v50  }
 0x85b   :  { %1189 = vset.pattern.permute.xlu1 %v1254_v10 }
 0x8c5   :  { %v506_v52 = vpop.permute.xlu1 %505 }
 0x8c6   :  { %v508_v53 = vadd.f32 %v506_v52, %v503_v51 }
 0x8c8   :  { %1206 = vtanh.f32 %v508_v53 }
 0x8d2   :  { %v1207_v54 = vpop.eup %1206 }
 0x8d3   :  { %v510_v55 = vmul.f32 %v1207_v54, %v501_v48 }
 0x8d5   :  { %512 = vrot.lane.b32.xlu0 %v510_v55, %s1258_s25 }
 0x8d6   :  { %v52_v57 = vpop.permute.xlu1 %51 }
 0x8d7   :  { %v77_v59 = vmul.f32 %v1329_v17, %v52_v57 }
 0x8d9   :  { %110 = vperm.xlu0 %1187, %v25_v50   ;;  %v89_v61 = vadd.f32 %v1334_v20, %v77_v59 }
 0x8dd   :  { %1188 = vset.pattern.permute.xlu0 %v1253_v8 }
 0x947   :  { %v513_v56 = vpop.permute.xlu0 %512 }
 0x948   :  { %1072 = vmatmul.mubr.msk.f32.vlgmr.msra.gmra.mrb[4].mxu0 %vm152_vm4, %v513_v56 }
 0x949   :  { %1156 = vmatpush3.bf16.msra.mxu0 %v1285_v4  ;;  %1093 = vmatprep.mubr.msk.f32.mxu0 %vm1251_vm0, %v1252_v6 }
 0x94a   :  { %1157 = vmatprep.subr.bf16.mxu0 %v1250_v3 }
 0x94d   :  { %1159 = vmatpush3.bf16.msra.mxu0 %v1298_v9 }
 0x94e   :  { %1166 = vmatprep.subr.bf16.mxu0 %v1250_v3 }
 0x958   :  { %v111_v58 = vpop.permute.xlu0 %110 }
 0x959   :  { %v133_v60 = vmul.f32 %v1337_v21, %v111_v58 }
 0x95b   :  { %v141_v62 = vadd.f32 %v133_v60, %v89_v61  ;;  %v28_v60 = vld [vmem:[%s1499_s0 + $0x38] sm:$0xff] }
 0xa1b   :  { %v582_v63 = vpop.f32.mrb[4].mxu0 }
 0xa1c   :  { %v586_v0 = vadd.f32 %v582_v63, %v141_v62  ;;  %v1073_v1 = vpop.f32.mrb[5].mxu0 }
 0xa1e   :  { %1208 = vtanh.f32 %v586_v0 }
 0xa28   :  { %v1209_v2 = vpop.eup %1208 }
 0xa29   :  { %v588_v5 = vmul.f32 %v1209_v2, %v1341_v31 }
 0xa2b   :  { %v589_v7 = vadd.f32 %v588_v5, %v1343_v33 }
 0xa2d   :  { %590 = vrot.lane.b32.xlu1 %v589_v7, %s1256_s21  ;;  %v593_v15 = vmul.f32 %v589_v7, %v508_v53 }
 0xa9f   :  { %v591_v11 = vpop.permute.xlu1 %590 }
 0xaa0   :  { %v592_v13 = vmul.f32 %v591_v11, %v589_v7 }
 0xaa2   :  { %595 = vrot.lane.b32.xlu0 %v592_v13, %s1257_s22 }
 0xaa6   :  { %56 = vperm.xlu0 %1188, %v26_v19  }
 0xb14   :  { %v596_v16 = vpop.permute.xlu0 %595 }
 0xb15   :  { %v598_v18 = vadd.f32 %v596_v16, %v593_v15 }
 0xb17   :  { %1210 = vtanh.f32 %v598_v18 }
 0xb21   :  { %v1211_v22 = vpop.eup %1210 }
 0xb22   :  { %v600_v23 = vmul.f32 %v1211_v22, %v591_v11 }
 0xb24   :  { %602 = vrot.lane.b32.xlu1 %v600_v23, %s1258_s25 }
 0xb25   :  { %v57_v25 = vpop.permute.xlu0 %56 }
 0xb26   :  { %v78_v26 = vmul.f32 %v1329_v17, %v57_v25 }
 0xb28   :  { %114 = vperm.xlu1 %1189, %v26_v19   ;;  %v90_v28 = vadd.f32 %v1334_v20, %v78_v26 }
 0xb96   :  { %v603_v24 = vpop.permute.xlu1 %602 }
 0xb97   :  { %1083 = vmatmul.mubr.msk.f32.vlgmr.msra.gmra.mrb[4].mxu1 %vm152_vm4, %v603_v24 }
 0xb98   :  { %1162 = vmatpush3.bf16.msra.mxu1 %v1285_v4  ;;  %1104 = vmatprep.mubr.msk.f32.mxu1 %vm1251_vm0, %v1252_v6 }
 0xb99   :  { %1163 = vmatprep.subr.bf16.mxu1 %v1250_v3 }
 0xb9c   :  { %1165 = vmatpush3.bf16.msra.mxu1 %v1298_v9 }
 0xba7   :  { %v115_v27 = vpop.permute.xlu1 %114 }
 0xba8   :  { %v134_v29 = vmul.f32 %v1337_v21, %v115_v27 }
 0xbaa   :  { %v142_v30 = vadd.f32 %v134_v29, %v90_v28 }
 0xc6a   :  { %v672_v32 = vpop.f32.mrb[4].mxu1 }
 0xc6b   :  { %v676_v34 = vadd.f32 %v672_v32, %v142_v30  ;;  %v1084_v35 = vpop.f32.mrb[5].mxu1 }
 0xc6c   :  { %v874_v35 = vsub.s32 3, %v1319_v12 }
 0xc6d   :  { %1212 = vtanh.f32 %v676_v34 }
 0xc77   :  { %v1213_v4 = vpop.eup %1212 }
 0xc78   :  { %v678_v36 = vmul.f32 %v1213_v4, %v1341_v31  ;;  %v875_v4 = vrot.slane %v1325_v14, %v874_v35 }
 0xc7a   :  { %v679_v37 = vadd.f32 %v678_v36, %v1343_v33 }
 0xc7c   :  { %680 = vrot.lane.b32.xlu1 %v679_v37, %s1256_s21  ;;  %v683_v40 = vmul.f32 %v679_v37, %v598_v18 }
 0xcee   :  { %v681_v9 = vpop.permute.xlu1 %680 }
 0xcef   :  { %v682_v38 = vmul.f32 %v681_v9, %v679_v37 }
 0xcf1   :  { %685 = vrot.lane.b32.xlu0 %v682_v38, %s1257_s22 }
 0xcf5   :  { %61 = vperm.xlu0 %1188, %v27_v39  }
 0xcf9   :  { %1191 = vset.pattern.permute.xlu0 %v1254_v10 }
 0xd63   :  { %v686_v41 = vpop.permute.xlu0 %685 }
 0xd64   :  { %v688_v42 = vadd.f32 %v686_v41, %v683_v40 }
 0xd66   :  { %1214 = vtanh.f32 %v688_v42 }
 0xd70   :  { %v1215_v43 = vpop.eup %1214 }
 0xd71   :  { %v690_v44 = vmul.f32 %v1215_v43, %v681_v9 }
 0xd73   :  { %692 = vrot.lane.b32.xlu1 %v690_v44, %s1258_s25 }
 0xd74   :  { %v62_v46 = vpop.permute.xlu0 %61 }
 0xd75   :  { %v79_v10 = vmul.f32 %v1329_v17, %v62_v46 }
 0xd77   :  { %118 = vperm.xlu1 %1189, %v27_v39   ;;  %v91_v49 = vadd.f32 %v1334_v20, %v79_v10 }
 0xd7b   :  { %1190 = vset.pattern.permute.xlu1 %v1253_v8 }
 0xde5   :  { %v693_v45 = vpop.permute.xlu1 %692 }
 0xde6   :  { %1094 = vmatmul.mubr.msk.f32.vlgmr.msra.gmra.mrb[6].mxu0 %vm152_vm4, %v693_v45 }
 0xde7   :  { %1115 = vmatprep.mubr.msk.f32.mxu0 %vm1251_vm0, %v1252_v6 }
 0xdf6   :  { %v119_v47 = vpop.permute.xlu1 %118 }
 0xdf7   :  { %v135_v48 = vmul.f32 %v1337_v21, %v119_v47 }
 0xdf9   :  { %v143_v50 = vadd.f32 %v135_v48, %v91_v49 }
 0xeb9   :  { %v762_v51 = vpop.f32.mrb[6].mxu0 }
 0xeba   :  { %v766_v52 = vadd.f32 %v762_v51, %v143_v50  ;;  %v1095_v53 = vpop.f32.mrb[7].mxu0 }
 0xebc   :  { %1216 = vtanh.f32 %v766_v52 }
 0xec6   :  { %v1217_v8 = vpop.eup %1216 }
 0xec7   :  { %v768_v54 = vmul.f32 %v1217_v8, %v1341_v31 }
 0xec9   :  { %v769_v55 = vadd.f32 %v768_v54, %v1343_v33 }
 0xecb   :  { %770 = vrot.lane.b32.xlu0 %v769_v55, %s1256_s21  ;;  %v773_v57 = vmul.f32 %v769_v55, %v688_v42 }
 0xf3d   :  { %v771_v6 = vpop.permute.xlu0 %770 }
 0xf3e   :  { %v772_v56 = vmul.f32 %v771_v6, %v769_v55 }
 0xf40   :  { %775 = vrot.lane.b32.xlu1 %v772_v56, %s1257_s22 }
 0xf44   :  { %66 = vperm.xlu1 %1190, %v28_v60  }
 0xfb2   :  { %v776_v58 = vpop.permute.xlu1 %775 }
 0xfb3   :  { %v778_v59 = vadd.f32 %v776_v58, %v773_v57 }
 0xfb5   :  { %1218 = vtanh.f32 %v778_v59 }
 0xfbf   :  { %v1219_v61 = vpop.eup %1218 }
 0xfc0   :  { %v780_v62 = vmul.f32 %v1219_v61, %v771_v6 }
 0xfc2   :  { %782 = vrot.lane.b32.xlu0 %v780_v62, %s1258_s25 }
 0xfc3   :  { %v67_v0 = vpop.permute.xlu1 %66 }
 0xfc4   :  { %v80_v1 = vmul.f32 %v1329_v17, %v67_v0  ;;  %v17_v17 = vld [vmem:[%s1500_s1 + $0x28] sm:$0xff] }
 0xfc6   :  { %122 = vperm.xlu0 %1191, %v28_v60   ;;  %v92_v5 = vadd.f32 %v1334_v20, %v80_v1  ;;  %v18_v20 = vld [vmem:[%s1500_s1 + $0x30] sm:$0xff] }
0x1034   :  { %v783_v63 = vpop.permute.xlu0 %782 }
0x1035   :  { %1105 = vmatmul.mubr.msk.f32.vlgmr.msra.gmra.mrb[6].mxu1 %vm152_vm4, %v783_v63 }
0x1045   :  { %v123_v2 = vpop.permute.xlu0 %122 }
0x1046   :  { %v136_v7 = vmul.f32 %v1337_v21, %v123_v2  ;;  %v19_v21 = vld [vmem:[%s1500_s1 + $0x38] sm:$0xff] }
0x1048   :  { %v144_v11 = vadd.f32 %v136_v7, %v92_v5 }
0x1108   :  { %v852_v13 = vpop.f32.mrb[6].mxu1 }
0x1109   :  { %v856_v15 = vadd.f32 %v852_v13, %v144_v11  ;;  %v1106_v16 = vpop.f32.mrb[7].mxu1 }
0x110b   :  { %1220 = vtanh.f32 %v856_v15 }
0x1115   :  { %v1221_v18 = vpop.eup %1220 }
0x1116   :  { %v858_v19 = vmul.f32 %v1221_v18, %v1341_v31  ;;  %v1167_v31 = vpack.c.bf16 %v18_v20, %v17_v17 }
0x1118   :  { %v859_v22 = vadd.f32 %v858_v19, %v1343_v33  ;;  %v20_v33 = vld [vmem:[%s1500_s1 + $0x40] sm:$0xff]  ;;  %1168 = vmatpush3.bf16.msra.mxu0 %v1167_v31  ;;  %s1259_s1 = smov [#allocation2]  }
0x1119   :  { %v1170_v25 = vpack.c.bf16 %v20_v33, %v19_v21  ;;  %1169 = vmatprep.subr.bf16.mxu0 %v1250_v3  ;;  %s958_s17 = sshll.u32 %s1259_s1, 4  ;;  %s959_s17 = int_to_ptr.vmem [resolvable:$true] %s958_s17 }
0x111a   :  { %860 = vrot.lane.b32.xlu1 %v859_v22, %s1256_s21  ;;  %v863_v26 = vmul.f32 %v859_v22, %v778_v59  ;;  %s1226_s18 = scalar_lea.vmem %s959_s17, 128  ;;  %p1231_p1 = scmp.lt.s32.totalorder %s959_s17, %s959_s17 }
0x111b   :  { %p1227_p0 = scmp.ne.s32.totalorder %s959_s17, %s1226_s18  ;;  %p1232_p2 = scmp.lt.s32.totalorder %s1226_s18, %s1226_s18 }
0x111c   :  { %1171 = vmatpush3.bf16.msra.mxu0 %v1170_v25 }
0x111d   :  { %p1233_p3 = por %p1232_p2, %p1231_p1 }
0x111f   :  { %p1234_p4 = pnand %p1233_p3, %p1227_p0 }
0x118c   :  { %v861_v23 = vpop.permute.xlu1 %860 }
0x118d   :  { %v862_v24 = vmul.f32 %v861_v23, %v859_v22 }
0x118f   :  { %865 = vrot.lane.b32.xlu1 %v862_v24, %s1257_s22 }
0x1201   :  { %v866_v27 = vpop.permute.xlu1 %865 }
0x1202   :  { %v868_v28 = vadd.f32 %v866_v27, %v863_v26 }
0x1204   :  { %1222 = vtanh.f32 %v868_v28 }
0x120e   :  { %v1223_v29 = vpop.eup %1222 }
0x120f   :  { %v870_v30 = vmul.f32 %v1223_v29, %v861_v23 }
0x1211   :  { %1224 = vtanh.f32 %v870_v30 }
0x121b   :  { %v1225_v32 = vpop.eup %1224 }
0x121c   :  { %877 = vrot.lane.b32.xlu0 %v1225_v32, %s1258_s25 }
0x128e   :  { %v878_v34 = vpop.permute.xlu0 %877 }
0x128f   :  { %1116 = vmatmul.mubr.msk.f32.vlgmr.msra.gmra.mrb[8].mxu0 %vm152_vm4, %v878_v34 }
0x1362   :  { %v947_v3 = vpop.f32.mrb[8].mxu0 }
0x1363   :  { %v948_v36 = vadd.f32 %v947_v3, %v875_v4  ;;  %v1117_v37 = vpop.f32.mrb[9].mxu0 }
0x1365   :  { %951 = vst [vmem:[#allocation2] sm:$0xff] %v948_v36 }
0x1366   :  { %1237 = shalt.err (!%p1234_p4)
}
0x1367   :  { %s1238_s21 = scalar_lea.hbm %s1501_s2, 128 }
0x1368   :  { %p1239_p5 = scmp.ne.s32.totalorder %s1501_s2, %s1238_s21  ;;  %p1242_p6 = scmp.lt.u32.totalorder %s1238_s21, %s1501_s2 }
0x136a   :  { %p1244_p7 = pnand %p1242_p6, %p1239_p5 }
0x136c   :  { %1247 = shalt.err (!%p1244_p7)
}
0x136d   :  { %961 = dma.vmem_to_hbm [thread:$0]  %s959_s17, 128, %s1501_s2, [#allocation3]  }
0x136e   :  { %1248 = dma.done.wait [#allocation3], 128  }
0x136f   :  { %1249 = vsyncadd [#allocation3], 4294967168 }
0x1370   :  { %965 = vsyncpa [#allocation3], 1 }

</bundles_post_ra>
